<compile_context>
chip_gen: v7x
topology: tpu7x:2x2x1
jax: 0.10.0
libtpu: 0.0.40
codegen_flags: <defaults>
</compile_context>

<pallas_src>
import jax
import jax.numpy as jnp
from jax.experimental import pallas as pl
from jax.experimental.pallas import tpu as pltpu


def _make_kl_kernel(T: float, B: int, TB: int, need_mask: bool):
    inv_T = float(1.0 / T)

    def kernel(stu_ref, tea_ref, out_ref):
        # stu_ref, tea_ref: (TB, C) logit tiles in VMEM (batch on sublanes,
        # classes on lanes -> reductions along axis=1 == PyTorch dim=1).
        s = stu_ref[...].astype(jnp.float32) * inv_T
        t = tea_ref[...].astype(jnp.float32) * inv_T

        # log_softmax(student) along classes.
        s_max = jnp.max(s, axis=1, keepdims=True)
        s_sh = s - s_max
        s_lse = jnp.log(jnp.sum(jnp.exp(s_sh), axis=1, keepdims=True))
        log_q = s_sh - s_lse

        # Teacher shifted exponentials + per-row normalizer Z.
        t_max = jnp.max(t, axis=1, keepdims=True)
        t_sh = t - t_max
        t_exp = jnp.exp(t_sh)
        t_sum = jnp.sum(t_exp, axis=1, keepdims=True)

        # Per-row KL without materializing p or log_p:
        #   sum_c p*(log_p - log_q) = (1/Z) * sum_c e^{t_sh}*(t_sh - log_q) - log Z
        row_num = jnp.sum(t_exp * (t_sh - log_q), axis=1, keepdims=True)  # (TB, 1)
        row_kl = row_num / t_sum - jnp.log(t_sum)                          # (TB, 1)

        if need_mask:
            # Zero out padded remainder rows of the last batch block.
            i = pl.program_id(0)
            row_idx = i * TB + jax.lax.broadcasted_iota(jnp.int32, row_kl.shape, 0)
            row_kl = jnp.where(row_idx < B, row_kl, 0.0)

        # One scalar partial sum per grid step (blocks are disjoint -> parallel-safe).
        out_ref[0, 0] = jnp.sum(row_kl)

    return kernel


def kl_loss(stu_logit: jax.Array, tea_logit: jax.Array, T: float,
            *, block_rows: int | None = None) -> jax.Array:
    """Pallas TPU implementation of KL_Loss.forward. Returns a scalar (f32)."""
    assert stu_logit.shape == tea_logit.shape and stu_logit.ndim == 2
    B, C = stu_logit.shape
    T = float(T)

    if block_rows is None:
        # Size the batch tile so 2 inputs x 2 pipeline buffers stay ~<= 16 MiB
        # (safe on v7x's 64 MiB VMEM with headroom; mem-bound so smaller tiles
        # on huge C still hit roofline).
        itemsize = jnp.dtype(stu_logit.dtype).itemsize
        per_tile_budget = 4 * 1024 * 1024  # bytes per single input tile
        tb = per_tile_budget // max(1, C * itemsize)
        block_rows = max(8, min(1024, (tb // 8) * 8))

    if B <= block_rows:
        TB = B  # single full-batch block (full-extent dims are always legal)
    else:
        TB = block_rows
    num_blocks = (B + TB - 1) // TB
    need_mask = (B % TB) != 0

    kernel = _make_kl_kernel(T, B, TB, need_mask)

    partials = pl.pallas_call(
        kernel,
        out_shape=jax.ShapeDtypeStruct((num_blocks, 1), jnp.float32),
        grid=(num_blocks,),
        in_specs=[
            pl.BlockSpec((TB, C), lambda i: (i, 0)),  # student logits tile
            pl.BlockSpec((TB, C), lambda i: (i, 0)),  # teacher logits tile
        ],
        out_specs=pl.BlockSpec((1, 1), lambda i: (i, 0), memory_space=pltpu.SMEM),
        compiler_params=pltpu.CompilerParams(
            dimension_semantics=("parallel",),
            vmem_limit_bytes=32 * 1024 * 1024,
        ),
    )(stu_logit, tea_logit)

    # Tiny final reduction + batchmean * T^2 scale in plain JAX.
    return jnp.sum(partials) * jnp.float32(T * T / B)


def _kl_loss_ref(stu_logit, tea_logit, T):
    # Pure-JAX reference for sanity checking.
    s = stu_logit.astype(jnp.float32) / T
    t = tea_logit.astype(jnp.float32) / T
    log_q = jax.nn.log_softmax(s, axis=1)
    p = jax.nn.softmax(t, axis=1)
    log_p = jax.nn.log_softmax(t, axis=1)
    B = stu_logit.shape[0]
    return jnp.sum(p * (log_p - log_q)) / B * T * T


if __name__ == "__main__":
    key = jax.random.PRNGKey(0)
    k1, k2, k3, k4 = jax.random.split(key, 4)
    T = 4.0

    # Small shape consistent with the module's (batch, num_classes) logits.
    B, C = 8, 32
    stu = jax.random.normal(k1, (B, C), dtype=jnp.float32) * 2.0
    tea = jax.random.normal(k2, (B, C), dtype=jnp.float32) * 2.0
    out = jax.block_until_ready(kl_loss(stu, tea, T))
    ref = jax.block_until_ready(_kl_loss_ref(stu, tea, T))
    assert jnp.allclose(out, ref, rtol=1e-5, atol=1e-6), (out, ref)

    # Exercise the tiled path: multiple batch blocks + masked remainder rows.
    B2, C2 = 20, 256
    stu2 = jax.random.normal(k3, (B2, C2), dtype=jnp.float32) * 2.0
    tea2 = jax.random.normal(k4, (B2, C2), dtype=jnp.float32) * 2.0
    out2 = jax.block_until_ready(kl_loss(stu2, tea2, T, block_rows=8))
    ref2 = jax.block_until_ready(_kl_loss_ref(stu2, tea2, T))
    assert jnp.allclose(out2, ref2, rtol=1e-5, atol=1e-6), (out2, ref2)

    print("KERNEL_OK")
</pallas_src>

<mosaic_0001>
module attributes {stable_mosaic.version = 11 : i64} {
  func.func @kernel(%arg0: i32, %arg1: memref<8x32xf32, #tpu.memory_space<vmem>>, %arg2: memref<8x32xf32, #tpu.memory_space<vmem>>, %arg3: memref<1x1xf32, #tpu.memory_space<smem>>) attributes {dimension_semantics = [#tpu.dimension_semantics<parallel>], iteration_bounds = array<i64: 1>, scalar_prefetch = 0 : i64, scratch_operands = 0 : i64, tpu.core_type = #tpu.core_type<tc>, window_params = [{transform_indices = @transform_0, window_bounds = array<i64: 8, 32>}, {transform_indices = @transform_1, window_bounds = array<i64: 8, 32>}, {transform_indices = @transform_2, window_bounds = array<i64: 1, 1>}]} {
    %c0 = arith.constant 0 : index
    %c0_0 = arith.constant 0 : index
    %0 = vector.load %arg1[%c0, %c0_0] : memref<8x32xf32, #tpu.memory_space<vmem>>, vector<8x32xf32>
    %cst = arith.constant 2.500000e-01 : f32
    %1 = vector.broadcast %cst : f32 to vector<8x32xf32>
    %2 = arith.mulf %0, %1 : vector<8x32xf32>
    %c0_1 = arith.constant 0 : index
    %c0_2 = arith.constant 0 : index
    %3 = vector.load %arg2[%c0_1, %c0_2] : memref<8x32xf32, #tpu.memory_space<vmem>>, vector<8x32xf32>
    %cst_3 = arith.constant 2.500000e-01 : f32
    %4 = vector.broadcast %cst_3 : f32 to vector<8x32xf32>
    %5 = arith.mulf %3, %4 : vector<8x32xf32>
    %cst_4 = arith.constant dense<0xFF800000> : vector<8xf32>
    %6 = vector.multi_reduction <maximumf>, %2, %cst_4 [1] : vector<8x32xf32> to vector<8xf32>
    %7 = vector.shape_cast %6 : vector<8xf32> to vector<8x1xf32>
    %8 = vector.broadcast %7 : vector<8x1xf32> to vector<8x32xf32>
    %9 = arith.subf %2, %8 : vector<8x32xf32>
    %10 = math.exp %9 : vector<8x32xf32>
    %cst_5 = arith.constant dense<0.000000e+00> : vector<8xf32>
    %11 = vector.multi_reduction <add>, %10, %cst_5 [1] : vector<8x32xf32> to vector<8xf32>
    %12 = vector.shape_cast %11 : vector<8xf32> to vector<8x1xf32>
    %13 = math.log %12 : vector<8x1xf32>
    %14 = vector.broadcast %13 : vector<8x1xf32> to vector<8x32xf32>
    %15 = arith.subf %9, %14 : vector<8x32xf32>
    %cst_6 = arith.constant dense<0xFF800000> : vector<8xf32>
    %16 = vector.multi_reduction <maximumf>, %5, %cst_6 [1] : vector<8x32xf32> to vector<8xf32>
    %17 = vector.shape_cast %16 : vector<8xf32> to vector<8x1xf32>
    %18 = vector.broadcast %17 : vector<8x1xf32> to vector<8x32xf32>
    %19 = arith.subf %5, %18 : vector<8x32xf32>
    %20 = math.exp %19 : vector<8x32xf32>
    %cst_7 = arith.constant dense<0.000000e+00> : vector<8xf32>
    %21 = vector.multi_reduction <add>, %20, %cst_7 [1] : vector<8x32xf32> to vector<8xf32>
    %22 = vector.shape_cast %21 : vector<8xf32> to vector<8x1xf32>
    %23 = arith.subf %19, %15 : vector<8x32xf32>
    %24 = arith.mulf %20, %23 : vector<8x32xf32>
    %cst_8 = arith.constant dense<0.000000e+00> : vector<8xf32>
    %25 = vector.multi_reduction <add>, %24, %cst_8 [1] : vector<8x32xf32> to vector<8xf32>
    %26 = vector.shape_cast %25 : vector<8xf32> to vector<8x1xf32>
    %27 = arith.divf %26, %22 : vector<8x1xf32>
    %28 = math.log %22 : vector<8x1xf32>
    %29 = arith.subf %27, %28 : vector<8x1xf32>
    %30 = vector.shape_cast %29 : vector<8x1xf32> to vector<1x8x1xf32>
    %cst_9 = arith.constant dense<0.000000e+00> : vector<1xf32>
    %31 = vector.multi_reduction <add>, %30, %cst_9 [1, 2] : vector<1x8x1xf32> to vector<1xf32>
    %32 = vector.shape_cast %31 : vector<1xf32> to vector<1x1x1xf32>
    %33 = vector.extract %32[0, 0, 0] : f32 from vector<1x1x1xf32>
    %c0_10 = arith.constant 0 : index
    %c0_11 = arith.constant 0 : index
    %34 = memref.load %arg3[%c0_10, %c0_11] : memref<1x1xf32, #tpu.memory_space<smem>>
    memref.store %33, %arg3[%c0_10, %c0_11] : memref<1x1xf32, #tpu.memory_space<smem>>
    return
  }
  func.func @transform_0(%arg0: i32) -> (i32, i32) {
    %c0_i32 = arith.constant 0 : i32
    %c0_i32_0 = arith.constant 0 : i32
    return %arg0, %c0_i32 : i32, i32
  }
  func.func @transform_1(%arg0: i32) -> (i32, i32) {
    %c0_i32 = arith.constant 0 : i32
    %c0_i32_0 = arith.constant 0 : i32
    return %arg0, %c0_i32 : i32, i32
  }
  func.func @transform_2(%arg0: i32) -> (i32, i32) {
    %c0_i32 = arith.constant 0 : i32
    %c0_i32_0 = arith.constant 0 : i32
    return %arg0, %c0_i32 : i32, i32
  }
}

</mosaic_0001>

<bundles_post_ra>
// kernel: tpu_custom_call.1
= control target key start
LH: loop header
LB: loop body
LE: loop exit
PB: predicated region body
PF: predicated region fallthrough
CT: control target
= control target key end

     0   :  { %7 = vsyncpa [#allocation3], 0  ;;  %s234_s0 = inlined_call_operand.hbm [shape: f32[8,32], index: 0, kind: input, shape index: {}]   ;;  %s235_s1 = inlined_call_operand.hbm [shape: f32[8,32], index: 1, kind: input, shape index: {}]   ;;  %s236_s2 = inlined_call_operand.hbm [shape: f32[1,1], index: 2, kind: output, shape index: {}]  }
   0x1   :  { %8 = vsyncpa [#allocation6], 0 }
   0x2   :  { %9 = vsyncpa [#allocation4], 0  ;;  %s175_s9 = smov [#allocation2]   ;;  %s176_s11 = smov [#allocation5]  }
   0x3   :  { %s16_s10 = sshll.u32 %s175_s9, 4  ;;  %s26_s12 = sshll.u32 %s176_s11, 4  ;;  %s17_s10 = int_to_ptr.vmem [resolvable:$true] %s16_s10  ;;  %s27_s12 = int_to_ptr.vmem [resolvable:$true] %s26_s12 }
   0x4   :  { %s115_s15 = scalar_lea.hbm %s234_s0, 128 }
   0x5   :  { %p116_p0 = scmp.ne.s32.totalorder %s234_s0, %s115_s15  ;;  %p119_p1 = scmp.lt.u32.totalorder %s115_s15, %s234_s0 }
   0x7   :  { %p121_p2 = pnand %p119_p1, %p116_p0 }
   0x9   :  { %124 = shalt.err (!%p121_p2)
}
   0xa   :  { %s125_s20 = scalar_lea.vmem %s17_s10, 128  ;;  %p130_p4 = scmp.lt.s32.totalorder %s17_s10, %s17_s10 }
   0xb   :  { %p126_p3 = scmp.ne.s32.totalorder %s17_s10, %s125_s20  ;;  %p131_p5 = scmp.lt.s32.totalorder %s125_s20, %s125_s20 }
   0xd   :  { %p132_p6 = por %p131_p5, %p130_p4 }
   0xf   :  { %p133_p7 = pnand %p132_p6, %p126_p3 }
  0x11   :  { %136 = shalt.err (!%p133_p7)
}
  0x12   :  { %19 = dma.hbm_to_vmem [thread:$0]  %s234_s0, 128, %s17_s10, [#allocation3]  }
  0x13   :  { %s137_s25 = scalar_lea.hbm %s235_s1, 128 }
  0x14   :  { %p138_p8 = scmp.ne.s32.totalorder %s235_s1, %s137_s25  ;;  %p141_p9 = scmp.lt.u32.totalorder %s137_s25, %s235_s1 }
  0x16   :  { %p143_p10 = pnand %p141_p9, %p138_p8 }
  0x18   :  { %146 = shalt.err (!%p143_p10)
}
  0x19   :  { %s147_s30 = scalar_lea.vmem %s27_s12, 128  ;;  %p152_p12 = scmp.lt.s32.totalorder %s27_s12, %s27_s12 }
  0x1a   :  { %p148_p11 = scmp.ne.s32.totalorder %s27_s12, %s147_s30  ;;  %p153_p13 = scmp.lt.s32.totalorder %s147_s30, %s147_s30 }
  0x1c   :  { %p154_p0 = por %p153_p13, %p152_p12 }
  0x1e   :  { %p155_p1 = pnand %p154_p0, %p148_p11 }
  0x20   :  { %158 = shalt.err (!%p155_p1)
}
  0x21   :  { %29 = dma.hbm_to_vmem [thread:$0]  %s235_s1, 128, %s27_s12, [#allocation6]  }
  0x22   :  { %169 = dma.done.wait [#allocation3], 128  }
  0x23   :  { %170 = vsyncadd [#allocation3], 4294967168 }
  0x24   :  { %171 = dma.done.wait [#allocation6], 128  }
  0x25   :  { %172 = vsyncadd [#allocation6], 4294967168  ;;  %v36_v0 = vld [vmem:[#allocation2] sm:$0xff]  ;;  %vm40_vm0 = vcmask 261120   ;;  %v38_v3 = vld [vmem:[#allocation5] sm:$0xff]  ;;  %vm72_vm1 = vcmask 7168  }
  0x26   :  { %v37_v1 = vmul.f32 0.25, %v36_v0  ;;  %v39_v4 = vmul.f32 0.25, %v38_v3  ;;  %s159_s6 = scalar_lea.hbm %s236_s2, 16 }
  0x27   :  { %p160_p2 = scmp.ne.s32.totalorder %s236_s2, %s159_s6  ;;  %p163_p3 = scmp.lt.u32.totalorder %s159_s6, %s236_s2 }
  0x28   :  { %v41_v2 = vsel %vm40_vm0, %v37_v1, -inf  ;;  %v53_v5 = vsel %vm40_vm0, %v39_v4, -inf }
  0x29   :  { %42 = vmax.xlane.f32.xlu0 %v41_v2  ;;  %p165_p4 = pnand %p163_p3, %p160_p2 }
  0x2d   :  { %54 = vmax.xlane.f32.xlu0 %v53_v5 }
  0xb6   :  { %v43_v6 = vpop.xlane.xlu0 %42 }
  0xb7   :  { %v44_v7 = vsub.f32 %v37_v1, %v43_v6 }
  0xb9   :  { %v45_v8 = vmul.f32 1.442695, %v44_v7 }
  0xba   :  { %v55_v11 = vpop.xlane.xlu0 %54 }
  0xbb   :  { %105 = vpow2.f32 %v45_v8  ;;  %v56_v12 = vsub.f32 %v39_v4, %v55_v11 }
  0xbd   :  { %v57_v13 = vmul.f32 1.442695, %v56_v12 }
  0xbf   :  { %107 = vpow2.f32 %v57_v13 }
  0xc5   :  { %v106_v9 = vpop.eup %105 }
  0xc6   :  { %v47_v10 = vsel %vm40_vm0, %v106_v9, 0.0 }
  0xc7   :  { %48 = vadd.xlane.f32.xlu1 %v47_v10 }
  0xc9   :  { %v108_v14 = vpop.eup %107 }
  0xca   :  { %v59_v15 = vsel %vm40_vm0, %v108_v14, 0.0 }
  0xcb   :  { %60 = vadd.xlane.f32.xlu1 %v59_v15 }
 0x154   :  { %v49_v16 = vpop.xlane.xlu1 %48 }
 0x155   :  { %109 = vlog2.f32 %v49_v16 }
 0x158   :  { %v61_v23 = vpop.xlane.xlu1 %60 }
 0x159   :  { %111 = vlog2.f32 %v61_v23 }
 0x15a   :  { %113 = vrcp.f32 %v61_v23 }
 0x15f   :  { %v110_v17 = vpop.eup %109 }
 0x160   :  { %v51_v18 = vmul.f32 0.6931472, %v110_v17 }
 0x162   :  { %v52_v19 = vsub.f32 %v44_v7, %v51_v18 }
 0x163   :  { %v112_v24 = vpop.eup %111 }
 0x164   :  { %v62_v20 = vsub.f32 %v56_v12, %v52_v19  ;;  %v114_v25 = vpop.eup %113  ;;  %v70_v26 = vmul.f32 0.6931472, %v112_v24 }
 0x166   :  { %v63_v21 = vmul.f32 %v108_v14, %v62_v20 }
 0x168   :  { %v64_v22 = vsel %vm40_vm0, %v63_v21, 0.0 }
 0x169   :  { %65 = vadd.xlane.f32.xlu0 %v64_v22 }
 0x1f6   :  { %v66_v27 = vpop.xlane.xlu0 %65 }
 0x1f7   :  { %v68_v28 = vmul.f32 %v114_v25, %v66_v27 }
 0x1f9   :  { %v71_v29 = vsub.f32 %v68_v28, %v70_v26 }
 0x1fb   :  { %v73_v30 = vsel %vm72_vm1, %v71_v29, 0.0 }
 0x1fc   :  { %74 = vadd.xlane.f32.xlu1 %v73_v30 }
 0x289   :  { %v75_v31 = vpop.xlane.xlu1 %74 }
 0x28a   :  { %v76_v32 = vrot.slane %v75_v31, 4 }
 0x28c   :  { %v77_v33 = vadd.f32 %v76_v32, %v75_v31 }
 0x28e   :  { %v78_v34 = vrot.slane %v77_v33, 2 }
 0x290   :  { %v79_v35 = vadd.f32 %v78_v34, %v77_v33 }
 0x292   :  { %v80_v36 = vrot.slane %v79_v35, 1 }
 0x294   :  { %v81_v37 = vadd.f32 %v80_v36, %v79_v35 }
 0x296   :  { %100 = vpush %v81_v37 }
 0x2c7   :  { %s101_s1 = spop %100 }
 0x2c8   :  { %84 = sst [smem:[#allocation7]] %s101_s1 }
 0x2c9   :  { %168 = shalt.err (!%p165_p4)
}
 0x2ca   :  { %s177_s11 = smov [#allocation7]  }
 0x2cb   :  { %92 = dma.smem_to_hbm %s177_s11, 16, %s236_s2, [#allocation4]  }
 0x2cc   :  { %173 = dma.done.wait [#allocation4], 16  }
 0x2cd   :  { %174 = vsyncadd [#allocation4], 4294967280 }
 0x2ce   :  { %96 = sfence }
 0x2cf   :  { %97 = vsyncpa [#allocation3], 1 }
 0x2d0   :  { %98 = vsyncpa [#allocation6], 1 }
 0x2d1   :  { %99 = vsyncpa [#allocation4], 1 }

</bundles_post_ra>
